<compile_context>
chip_gen: v7x
topology: tpu7x:2x2x1
jax: 0.10.0
libtpu: 0.0.40
codegen_flags: <defaults>
</compile_context>

<pallas_src>
import functools

import jax
import jax.numpy as jnp
from jax.experimental import pallas as pl
from jax.experimental.pallas import tpu as pltpu

EPS = 1e-5
_MIB = 1024 * 1024


@functools.lru_cache(maxsize=1)
def _hw_config():
    """Generation-specific budgets: VMEM limit, resident threshold, per-step tile bytes."""
    vmem_cap = None
    try:
        vmem_cap = int(pltpu.get_tpu_info().vmem_capacity_bytes)
    except Exception:
        vmem_cap = None
    if vmem_cap is not None and vmem_cap > 96 * _MIB:
        # v5e / v6e: 128 MiB physical VMEM (scoped defaults are only 16/32 MiB).
        return {"vmem_limit": 100 * _MIB, "resident_limit": 16 * _MIB,
                "tile_target": 2 * _MIB}
    if vmem_cap is not None:
        # v7x-class: 64 MiB VMEM/TC, ~2x HBM BW -> bigger per-step tiles, smaller
        # resident threshold (the resident path only uses one TensorCore).
        return {"vmem_limit": 48 * _MIB, "resident_limit": 6 * _MIB,
                "tile_target": 4 * _MIB}
    # Unknown chip: conservative settings that fit every generation.
    return {"vmem_limit": 48 * _MIB, "resident_limit": 6 * _MIB,
            "tile_target": 2 * _MIB}


# --------------------------------------------------------------------------
# Path A: whole slab resident in VMEM (small inputs) — single fused kernel.
# 1 HBM read + 1 HBM write; stable centered variance.
# --------------------------------------------------------------------------
def _bn1d_resident_kernel(x_ref, gamma_ref, beta_ref, o_ref):
    # x_ref: (N, C, L); gamma_ref/beta_ref: (1, C, 1); o_ref: (N, C, L)
    n, _, l = x_ref.shape
    inv_count = 1.0 / float(n * l)

    x_raw = x_ref[...]
    x = x_raw.astype(jnp.float32)
    # NaN flag kept as a (1,1,1) vector value (no scalar extraction needed).
    nan_any = jnp.max(
        jnp.where(jnp.isnan(x_raw), 1.0, 0.0).astype(jnp.float32), keepdims=True) > 0.0

    # Per-channel mean / biased variance over (N, L): lane reduce, then batch reduce.
    s = jnp.sum(jnp.sum(x, axis=2, keepdims=True), axis=0, keepdims=True)      # (1,C,1)
    mean = s * inv_count
    xc = x - mean
    var = jnp.sum(jnp.sum(xc * xc, axis=2, keepdims=True), axis=0,
                  keepdims=True) * inv_count                                    # (1,C,1)
    scale = jax.lax.rsqrt(var + EPS) * gamma_ref[...]
    y = (xc * scale + beta_ref[...]).astype(o_ref.dtype)

    o_ref[...] = jnp.where(nan_any, x_raw, y)


def _bn1d_resident(x, gamma, beta, vmem_limit):
    N, C, L = x.shape
    g = gamma.reshape(1, C, 1).astype(jnp.float32)
    b = beta.reshape(1, C, 1).astype(jnp.float32)
    return pl.pallas_call(
        _bn1d_resident_kernel,
        out_shape=jax.ShapeDtypeStruct((N, C, L), x.dtype),
        in_specs=[
            pl.BlockSpec((N, C, L), lambda: (0, 0, 0)),
            pl.BlockSpec((1, C, 1), lambda: (0, 0, 0)),
            pl.BlockSpec((1, C, 1), lambda: (0, 0, 0)),
        ],
        out_specs=pl.BlockSpec((N, C, L), lambda: (0, 0, 0)),
        compiler_params=pltpu.CompilerParams(vmem_limit_bytes=vmem_limit),
    )(x, g, b)


# --------------------------------------------------------------------------
# Path B: grid-tiled two-pass (Welford/Chan stats, then normalize).
# --------------------------------------------------------------------------
def _bn1d_stats_kernel(x_ref, mean_ref, m2_ref, nan_ref, *, true_l, tl):
    # x_ref: (TN, C, TL); mean/m2/nan refs: (TN, C, 1), pinned over the lane-tile axis.
    lt = pl.program_id(1)
    x = x_ref[...].astype(jnp.float32)

    # Mask lanes past the true L (last tile may be partial; OOB lanes hold garbage).
    start = lt * tl
    lane = jax.lax.broadcasted_iota(jnp.int32, x.shape, x.ndim - 1)
    valid = lane < (true_l - start)
    n_b = jnp.minimum(true_l - start, tl).astype(jnp.float32)       # valid count, > 0

    xm = jnp.where(valid, x, 0.0)
    mean_b = jnp.sum(xm, axis=-1, keepdims=True) * (1.0 / n_b)       # (TN, C, 1)
    diff = jnp.where(valid, x - mean_b, 0.0)
    m2_b = jnp.sum(diff * diff, axis=-1, keepdims=True)              # centered, stable
    nan_b = jnp.sum(
        jnp.where(jnp.logical_and(valid, jnp.isnan(x)), 1.0, 0.0),
        axis=-1, keepdims=True)

    @pl.when(lt == 0)
    def _():
        mean_ref[...] = mean_b
        m2_ref[...] = m2_b
        nan_ref[...] = nan_b

    @pl.when(lt > 0)
    def _():
        # Chan merge of (running) and (this tile) per-channel Welford states.
        n_a = (lt * tl).astype(jnp.float32)       # previous tiles are all fully valid
        count = n_a + n_b
        delta = mean_b - mean_ref[...]
        mean_ref[...] = mean_ref[...] + delta * (n_b / count)
        m2_ref[...] = m2_ref[...] + m2_b + (delta * delta) * (n_a * n_b / count)
        nan_ref[...] = nan_ref[...] + nan_b


def _bn1d_normalize_kernel(x_ref, mean_ref, m2_ref, nan_ref, gamma_ref, beta_ref,
                           o_ref, *, n_batch, count_per_n):
    # x_ref/o_ref: (TN, C, TL); mean/m2/nan refs: (N, C, 1); gamma/beta: (1, C, 1).
    total = float(n_batch) * count_per_n
    mean_p = mean_ref[...]
    m2_p = m2_ref[...]

    # Exact parallel-variance combine over the batch partials (equal counts per n).
    mean = jnp.sum(mean_p, axis=0, keepdims=True) * (1.0 / float(n_batch))   # (1,C,1)
    d = mean_p - mean
    m2 = jnp.sum(m2_p + count_per_n * (d * d), axis=0, keepdims=True)        # (1,C,1)
    var = m2 * (1.0 / total)
    scale = jax.lax.rsqrt(var + EPS) * gamma_ref[...]
    shift = beta_ref[...] - mean * scale

    nan_any = jnp.max(nan_ref[...], keepdims=True) > 0.0                      # (1,1,1)

    x_raw = x_ref[...]
    y = (x_raw.astype(jnp.float32) * scale + shift).astype(o_ref.dtype)
    o_ref[...] = jnp.where(nan_any, x_raw, y)


def _pick_tiles(N, C, L, itemsize, target_bytes):
    """Pick (TN, TL): lane tile is a multiple of 128 (or == L when L < 128), sized by
    bytes toward target_bytes; multiple batch rows are blocked when C*TL is small."""
    if L < 128:
        tl = L
    else:
        tl = max(128, (target_bytes // (C * itemsize)) // 128 * 128)
        tl = min(tl, (L // 128) * 128)
    tile_bytes = C * tl * itemsize
    tn = 1
    if tile_bytes < target_bytes and N > 1:
        want = max(1, target_bytes // tile_bytes)
        for d in range(int(min(N, want)), 0, -1):
            if N % d == 0:
                tn = d
                break
    return int(tn), int(tl)


def _bn1d_tiled(x, gamma, beta, cfg):
    N, C, L = x.shape
    itemsize = x.dtype.itemsize
    TN, TL = _pick_tiles(N, C, L, itemsize, cfg["tile_target"])
    grid = (N // TN, pl.cdiv(L, TL))

    # ---- pass 0: per-(batch-block, channel) Welford partials ---------------------
    stats_shape = jax.ShapeDtypeStruct((N, C, 1), jnp.float32)
    mean_p, m2_p, nan_p = pl.pallas_call(
        functools.partial(_bn1d_stats_kernel, true_l=L, tl=TL),
        out_shape=(stats_shape, stats_shape, stats_shape),
        grid_spec=pltpu.PrefetchScalarGridSpec(
            num_scalar_prefetch=0,
            grid=grid,
            in_specs=[pl.BlockSpec((TN, C, TL), lambda nb, lt: (nb, 0, lt))],
            out_specs=(
                pl.BlockSpec((TN, C, 1), lambda nb, lt: (nb, 0, 0)),
                pl.BlockSpec((TN, C, 1), lambda nb, lt: (nb, 0, 0)),
                pl.BlockSpec((TN, C, 1), lambda nb, lt: (nb, 0, 0)),
            ),
        ),
        compiler_params=pltpu.CompilerParams(
            dimension_semantics=("parallel", "arbitrary"),
            vmem_limit_bytes=cfg["vmem_limit"],
        ),
    )(x)

    g = gamma.reshape(1, C, 1).astype(jnp.float32)
    b = beta.reshape(1, C, 1).astype(jnp.float32)

    # ---- pass 1: normalize tile-by-tile (combine done in-kernel, no host ops) -----
    out = pl.pallas_call(
        functools.partial(_bn1d_normalize_kernel, n_batch=N, count_per_n=float(L)),
        out_shape=jax.ShapeDtypeStruct((N, C, L), x.dtype),
        grid_spec=pltpu.PrefetchScalarGridSpec(
            num_scalar_prefetch=0,
            grid=grid,
            in_specs=[
                pl.BlockSpec((TN, C, TL), lambda nb, lt: (nb, 0, lt)),
                pl.BlockSpec((N, C, 1), lambda nb, lt: (0, 0, 0)),
                pl.BlockSpec((N, C, 1), lambda nb, lt: (0, 0, 0)),
                pl.BlockSpec((N, C, 1), lambda nb, lt: (0, 0, 0)),
                pl.BlockSpec((1, C, 1), lambda nb, lt: (0, 0, 0)),
                pl.BlockSpec((1, C, 1), lambda nb, lt: (0, 0, 0)),
            ],
            out_specs=pl.BlockSpec((TN, C, TL), lambda nb, lt: (nb, 0, lt)),
        ),
        compiler_params=pltpu.CompilerParams(
            dimension_semantics=("parallel", "parallel"),
            vmem_limit_bytes=cfg["vmem_limit"],
        ),
    )(x, mean_p, m2_p, nan_p, g, b)
    return out


# --------------------------------------------------------------------------
# Public entry point
# --------------------------------------------------------------------------
def batchnorm1d_forward(x, gamma, beta, *, force_tiled=False, tile_target_bytes=None):
    """x: (N, C, L); gamma, beta: (C,). Returns (N, C, L)."""
    cfg = dict(_hw_config())
    if tile_target_bytes is not None:
        cfg["tile_target"] = int(tile_target_bytes)
    N, C, L = x.shape
    nbytes = N * C * L * x.dtype.itemsize
    if force_tiled or nbytes > cfg["resident_limit"]:
        return _bn1d_tiled(x, gamma, beta, cfg)
    return _bn1d_resident(x, gamma, beta, cfg["vmem_limit"])


# --------------------------------------------------------------------------
# Pure-JAX reference + tests
# --------------------------------------------------------------------------
def _reference(x, gamma, beta):
    xf = x.astype(jnp.float32)
    mean = jnp.mean(xf, axis=(0, 2), keepdims=True)
    var = jnp.mean((xf - mean) ** 2, axis=(0, 2), keepdims=True)
    y = (xf - mean) / jnp.sqrt(var + EPS)
    y = (y * gamma.reshape(1, -1, 1) + beta.reshape(1, -1, 1)).astype(x.dtype)
    return jnp.where(jnp.any(jnp.isnan(x)), x, y)


if __name__ == "__main__":
    key = jax.random.PRNGKey(0)

    # ---- small shape: resident path + forced tiled path --------------------------
    N, C, L = 2, 4, 16
    x = jax.random.normal(key, (N, C, L), dtype=jnp.float32)
    gamma = 1.0 + 0.1 * jnp.arange(C, dtype=jnp.float32)
    beta = 0.05 * jnp.arange(C, dtype=jnp.float32)
    ref = _reference(x, gamma, beta)

    out_res = jax.block_until_ready(batchnorm1d_forward(x, gamma, beta))
    assert jnp.allclose(out_res, ref, atol=1e-4, rtol=1e-4), "resident path mismatch"

    out_tiled = jax.block_until_ready(batchnorm1d_forward(x, gamma, beta, force_tiled=True))
    assert jnp.allclose(out_tiled, ref, atol=1e-4, rtol=1e-4), "tiled path mismatch"

    # NaN passthrough on both paths.
    x_nan = x.at[0, 1, 3].set(jnp.nan)
    for ft in (False, True):
        out_nan = jax.block_until_ready(batchnorm1d_forward(x_nan, gamma, beta, force_tiled=ft))
        assert jnp.array_equal(
            jnp.nan_to_num(out_nan, nan=12345.0), jnp.nan_to_num(x_nan, nan=12345.0)
        ), f"NaN passthrough failed (force_tiled={ft})"

    # ---- multi-tile Chan accumulation (tiny tile target forces a 32-step lane grid)
    N2, C2, L2 = 2, 8, 4096
    x2 = jax.random.normal(jax.random.PRNGKey(1), (N2, C2, L2), dtype=jnp.float32)
    gamma2 = 1.0 + 0.1 * jnp.arange(C2, dtype=jnp.float32)
    beta2 = 0.05 * jnp.arange(C2, dtype=jnp.float32)
    out2 = jax.block_until_ready(
        batchnorm1d_forward(x2, gamma2, beta2, force_tiled=True, tile_target_bytes=4096))
    ref2 = _reference(x2, gamma2, beta2)
    assert jnp.allclose(out2, ref2, atol=2e-4, rtol=2e-4), "tiled multi-tile mismatch"

    # ---- L not a multiple of 128: masked partial lane tile ------------------------
    N3, C3, L3 = 3, 5, 1000
    x3 = jax.random.normal(jax.random.PRNGKey(2), (N3, C3, L3), dtype=jnp.float32) * 2.0 + 3.0
    gamma3 = 1.0 + 0.1 * jnp.arange(C3, dtype=jnp.float32)
    beta3 = 0.05 * jnp.arange(C3, dtype=jnp.float32)
    out3 = jax.block_until_ready(
        batchnorm1d_forward(x3, gamma3, beta3, force_tiled=True, tile_target_bytes=4096))
    ref3 = _reference(x3, gamma3, beta3)
    assert jnp.allclose(out3, ref3, atol=2e-4, rtol=2e-4), "masked lane-tile mismatch"

    x3_nan = x3.at[1, 2, 777].set(jnp.nan)
    out3n = jax.block_until_ready(
        batchnorm1d_forward(x3_nan, gamma3, beta3, force_tiled=True, tile_target_bytes=4096))
    assert jnp.array_equal(
        jnp.nan_to_num(out3n, nan=12345.0), jnp.nan_to_num(x3_nan, nan=12345.0)
    ), "NaN passthrough failed (masked tiled path)"

    print("KERNEL_OK")
</pallas_src>

<mosaic_0001>
module attributes {stable_mosaic.version = 11 : i64} {
  func.func @_bn1d_resident_kernel(%arg0: memref<2x4x16xf32, #tpu.memory_space<vmem>>, %arg1: memref<1x4x1xf32, #tpu.memory_space<vmem>>, %arg2: memref<1x4x1xf32, #tpu.memory_space<vmem>>, %arg3: memref<2x4x16xf32, #tpu.memory_space<vmem>>) attributes {dimension_semantics = [], scalar_prefetch = 0 : i64, scratch_operands = 0 : i64, tpu.core_type = #tpu.core_type<tc>} {
    %c0 = arith.constant 0 : index
    %c0_0 = arith.constant 0 : index
    %c0_1 = arith.constant 0 : index
    %0 = vector.load %arg0[%c0, %c0_0, %c0_1] : memref<2x4x16xf32, #tpu.memory_space<vmem>>, vector<2x4x16xf32>
    %1 = arith.cmpf one, %0, %0 : vector<2x4x16xf32>
    %cst = arith.constant 1.000000e+00 : f32
    %cst_2 = arith.constant 0.000000e+00 : f32
    %2 = vector.broadcast %cst : f32 to vector<2x4x16xf32>
    %3 = vector.broadcast %cst_2 : f32 to vector<2x4x16xf32>
    %4 = arith.select %1, %2, %3 : vector<2x4x16xi1>, vector<2x4x16xf32>
    %5 = vector.shape_cast %4 : vector<2x4x16xf32> to vector<1x2x4x16xf32>
    %cst_3 = arith.constant dense<0xFF800000> : vector<1xf32>
    %6 = vector.multi_reduction <maximumf>, %5, %cst_3 [1, 2, 3] : vector<1x2x4x16xf32> to vector<1xf32>
    %7 = vector.shape_cast %6 : vector<1xf32> to vector<1x1x1x1xf32>
    %8 = vector.extract %7[0, 0, 0, 0] : f32 from vector<1x1x1x1xf32>
    %9 = vector.broadcast %8 : f32 to vector<1x1x1xf32>
    %cst_4 = arith.constant 0.000000e+00 : f32
    %10 = vector.broadcast %cst_4 : f32 to vector<1x1x1xf32>
    %11 = arith.cmpf ogt, %9, %10 : vector<1x1x1xf32>
    %cst_5 = arith.constant dense<0.000000e+00> : vector<2x4xf32>
    %12 = vector.multi_reduction <add>, %0, %cst_5 [2] : vector<2x4x16xf32> to vector<2x4xf32>
    %13 = vector.shape_cast %12 : vector<2x4xf32> to vector<2x4x1xf32>
    %cst_6 = arith.constant dense<0.000000e+00> : vector<4x1xf32>
    %14 = vector.multi_reduction <add>, %13, %cst_6 [0] : vector<2x4x1xf32> to vector<4x1xf32>
    %15 = vector.shape_cast %14 : vector<4x1xf32> to vector<1x4x1xf32>
    %cst_7 = arith.constant 3.125000e-02 : f32
    %16 = vector.broadcast %cst_7 : f32 to vector<1x4x1xf32>
    %17 = arith.mulf %15, %16 : vector<1x4x1xf32>
    %18 = vector.broadcast %17 : vector<1x4x1xf32> to vector<2x4x16xf32>
    %19 = arith.subf %0, %18 : vector<2x4x16xf32>
    %20 = arith.mulf %19, %19 : vector<2x4x16xf32>
    %cst_8 = arith.constant dense<0.000000e+00> : vector<2x4xf32>
    %21 = vector.multi_reduction <add>, %20, %cst_8 [2] : vector<2x4x16xf32> to vector<2x4xf32>
    %22 = vector.shape_cast %21 : vector<2x4xf32> to vector<2x4x1xf32>
    %cst_9 = arith.constant dense<0.000000e+00> : vector<4x1xf32>
    %23 = vector.multi_reduction <add>, %22, %cst_9 [0] : vector<2x4x1xf32> to vector<4x1xf32>
    %24 = vector.shape_cast %23 : vector<4x1xf32> to vector<1x4x1xf32>
    %cst_10 = arith.constant 3.125000e-02 : f32
    %25 = vector.broadcast %cst_10 : f32 to vector<1x4x1xf32>
    %26 = arith.mulf %24, %25 : vector<1x4x1xf32>
    %cst_11 = arith.constant 9.99999974E-6 : f32
    %27 = vector.broadcast %cst_11 : f32 to vector<1x4x1xf32>
    %28 = arith.addf %26, %27 : vector<1x4x1xf32>
    %29 = math.rsqrt %28 : vector<1x4x1xf32>
    %c0_12 = arith.constant 0 : index
    %c0_13 = arith.constant 0 : index
    %c0_14 = arith.constant 0 : index
    %30 = vector.load %arg1[%c0_12, %c0_13, %c0_14] : memref<1x4x1xf32, #tpu.memory_space<vmem>>, vector<1x4x1xf32>
    %31 = arith.mulf %29, %30 : vector<1x4x1xf32>
    %32 = vector.broadcast %31 : vector<1x4x1xf32> to vector<2x4x16xf32>
    %33 = arith.mulf %19, %32 : vector<2x4x16xf32>
    %c0_15 = arith.constant 0 : index
    %c0_16 = arith.constant 0 : index
    %c0_17 = arith.constant 0 : index
    %34 = vector.load %arg2[%c0_15, %c0_16, %c0_17] : memref<1x4x1xf32, #tpu.memory_space<vmem>>, vector<1x4x1xf32>
    %35 = vector.broadcast %34 : vector<1x4x1xf32> to vector<2x4x16xf32>
    %36 = arith.addf %33, %35 : vector<2x4x16xf32>
    %37 = vector.shape_cast %11 : vector<1x1x1xi1> to vector<1x1x1xi1>
    %38 = vector.broadcast %37 : vector<1x1x1xi1> to vector<2x4x16xi1>
    %39 = arith.select %38, %0, %36 : vector<2x4x16xi1>, vector<2x4x16xf32>
    %c0_18 = arith.constant 0 : index
    %c0_19 = arith.constant 0 : index
    %c0_20 = arith.constant 0 : index
    %40 = vector.load %arg3[%c0_18, %c0_19, %c0_20] : memref<2x4x16xf32, #tpu.memory_space<vmem>>, vector<2x4x16xf32>
    tpu.vector_store %arg3[%c0_18, %c0_19, %c0_20], %39 {strides = array<i32>} : memref<2x4x16xf32, #tpu.memory_space<vmem>>, vector<2x4x16xf32>,
    return
  }
}

</mosaic_0001>

<bundles_post_ra>
// kernel: tpu_custom_call.1
= control target key start
LH: loop header
LB: loop body
LE: loop exit
PB: predicated region body
PF: predicated region fallthrough
CT: control target
= control target key end

     0   :  { %vm21_vm0 = vcmask 125952   ;;  %s212_s0 = inlined_call_operand.vmem [shape: f32[2,4,16], index: 0, kind: input, shape index: {}]   ;;  %s213_s1 = inlined_call_operand.vmem [shape: f32[1,4,1], index: 1, kind: input, shape index: {}]   ;;  %s214_s2 = inlined_call_operand.vmem [shape: f32[1,4,1], index: 2, kind: input, shape index: {}]   ;;  %s215_s3 = inlined_call_operand.hbm [shape: f32[2,4,16], index: 3, kind: output, shape index: {}]  }
   0x1   :  { %v165_v0 = vld [vmem:[%s212_s0] sm:$0xf]  ;;  %v170_v1 = vld [vmem:[%s212_s0 + $0x4] sm:$0xf] }
   0x2   :  { %v36_v2 = vsel %vm21_vm0, %v165_v0, 0.0 }
   0x3   :  { %8 = vsyncpa [#allocation3], 0  ;;  %37 = vadd.xlane.f32.xlu0 %v36_v2  ;;  %v39_v3 = vsel %vm21_vm0, %v170_v1, 0.0  ;;  %vm17_vm1 = vcmp.ne.f32.partialorder %v165_v0, %v165_v0  ;;  %vm18_vm2 = vcmp.ne.f32.partialorder %v170_v1, %v170_v1  ;;  %v137_v4 = vmov 0.0   ;;  %v72_v23 = vld [vmem:[%s214_s2] sm:$0xf] }
   0x4   :  { %v19_v5 = vsel %vm17_vm1, 1.0, %v137_v4  ;;  %v20_v6 = vsel %vm18_vm2, 1.0, %v137_v4  ;;  %vm42_vm3 = vcmask 1043456   ;;  %v138_v22 = vmov 0   ;;  %v63_v38 = vld [vmem:[%s213_s1] sm:$0xf] }
   0x5   :  { %v22_v7 = vsel %vm21_vm0, %v19_v5, -inf  ;;  %v23_v8 = vsel %vm21_vm0, %v20_v6, -inf  ;;  %109 = vset.pattern.permute.xlu1 %v138_v22  ;;  %110 = vset.pattern.permute.xlu0 %v138_v22  ;;  %s139_s19 = smov [#allocation2]  }
   0x6   :  { %v24_v9 = vmax.f32 %v22_v7, %v23_v8  ;;  %s91_s20 = sshll.u32 %s139_s19, 4  ;;  %s92_s20 = int_to_ptr.vmem [resolvable:$true] %s91_s20 }
   0x7   :  { %40 = vadd.xlane.f32.xlu0 %v39_v3  ;;  %s113_s1 = scalar_lea.vmem %s92_s20, 128  ;;  %p118_p1 = scmp.lt.s32.totalorder %s92_s20, %s92_s20 }
   0x8   :  { %p114_p0 = scmp.ne.s32.totalorder %s92_s20, %s113_s1  ;;  %p119_p2 = scmp.lt.s32.totalorder %s113_s1, %s113_s1 }
   0xa   :  { %p120_p3 = por %p119_p2, %p118_p1 }
   0xb   :  { %25 = vmax.xlane.f32.xlu0 %v24_v9 }
   0xc   :  { %p121_p4 = pnand %p120_p3, %p114_p0 }
  0x21   :  { %75 = vperm.xlu0 %110, %v72_v23  }
  0x90   :  { %v38_v10 = vpop.xlane.xlu0 %37 }
  0x91   :  { %v43_v12 = vsel %vm42_vm3, %v38_v10, 0.0 }
  0x94   :  { %v41_v11 = vpop.xlane.xlu0 %40 }
  0x95   :  { %v44_v13 = vsel %vm42_vm3, %v41_v11, 0.0 }
  0x96   :  { %v45_v14 = vadd.f32 %v44_v13, %v43_v12 }
  0x98   :  { %v46_v15 = vmul.f32 0.03125, %v45_v14  ;;  %v26_v24 = vpop.xlane.xlu0 %25 }
  0x99   :  { %v27_v25 = vrot.slane %v26_v24, 4 }
  0x9a   :  { %v48_v16 = vsub.f32 %v170_v1, %v46_v15  ;;  %v47_v17 = vsub.f32 %v165_v0, %v46_v15 }
  0x9b   :  { %v28_v26 = vmax.f32 %v26_v24, %v27_v25 }
  0x9c   :  { %v49_v18 = vmul.f32 %v47_v17, %v47_v17  ;;  %v50_v20 = vmul.f32 %v48_v16, %v48_v16 }
  0x9d   :  { %v29_v27 = vrot.slane %v28_v26, 2 }
  0x9e   :  { %v51_v19 = vsel %vm21_vm0, %v49_v18, 0.0  ;;  %v54_v21 = vsel %vm21_vm0, %v50_v20, 0.0 }
  0x9f   :  { %52 = vadd.xlane.f32.xlu1 %v51_v19  ;;  %v30_v28 = vmax.f32 %v28_v26, %v29_v27 }
  0xa0   :  { %v76_v42 = vpop.permute.xlu0 %75 }
  0xa1   :  { %v31_v29 = vrot.slane %v30_v28, 1 }
  0xa3   :  { %55 = vadd.xlane.f32.xlu1 %v54_v21  ;;  %v32_v30 = vmax.f32 %v30_v28, %v31_v29 }
  0xa5   :  { %102 = vpush %v32_v30 }
  0xd6   :  { %s103_s18 = spop %102 }
  0xd7   :  { %v34_v43 = vstv %s103_s18 }
  0xd8   :  { %vm35_vm4 = vcmp.gt.f32.partialorder %v34_v43, 0.0 }
 0x12c   :  { %v53_v31 = vpop.xlane.xlu1 %52 }
 0x12d   :  { %v57_v33 = vsel %vm42_vm3, %v53_v31, 0.0 }
 0x130   :  { %v56_v32 = vpop.xlane.xlu1 %55 }
 0x131   :  { %v58_v34 = vsel %vm42_vm3, %v56_v32, 0.0 }
 0x132   :  { %v59_v35 = vadd.f32 %v58_v34, %v57_v33 }
 0x134   :  { %v60_v36 = vmul.f32 0.03125, %v59_v35 }
 0x136   :  { %v61_v37 = vadd.f32 1e-05, %v60_v36 }
 0x138   :  { %111 = vrsqrt.f32 %v61_v37 }
 0x142   :  { %v112_v39 = vpop.eup %111 }
 0x143   :  { %v64_v40 = vmul.f32 %v112_v39, %v63_v38 }
 0x145   :  { %67 = vperm.xlu1 %109, %v64_v40  }
 0x1c4   :  { %v68_v41 = vpop.permute.xlu1 %67 }
 0x1c5   :  { %v70_v44 = vmul.f32 %v68_v41, %v47_v17  ;;  %v71_v45 = vmul.f32 %v68_v41, %v48_v16 }
 0x1c7   :  { %v78_v46 = vadd.f32 %v76_v42, %v70_v44  ;;  %v79_v47 = vadd.f32 %v76_v42, %v71_v45 }
 0x1c9   :  { %v82_v48 = vsel %vm35_vm4, %v165_v0, %v78_v46  ;;  %v83_v49 = vsel %vm35_vm4, %v170_v1, %v79_v47 }
 0x1ca   :  { %84 = vst.msk [vmem:[#allocation2] sm:$0xf] %vm21_vm0, %v82_v48  ;;  %85 = vst.msk [vmem:[#allocation2 + $0x4] sm:$0xf] %vm21_vm0, %v83_v49 }
 0x1cb   :  { %124 = shalt.err (!%p121_p4)
}
 0x1cc   :  { %s125_s23 = scalar_lea.hbm %s215_s3, 128 }
 0x1cd   :  { %p126_p5 = scmp.ne.s32.totalorder %s215_s3, %s125_s23  ;;  %p129_p6 = scmp.lt.u32.totalorder %s125_s23, %s215_s3 }
 0x1cf   :  { %p131_p7 = pnand %p129_p6, %p126_p5 }
 0x1d1   :  { %134 = shalt.err (!%p131_p7)
}
 0x1d2   :  { %s140_s28 = smov 64   ;;  %s141_s29 = smov 4  }
 0x1d3   :  { %97 = dma.vmem_to_hbm [thread:$0]  %s92_s20, 128, %s215_s3, [#allocation3], %s140_s28, %s140_s28, %s141_s29  }
 0x1d4   :  { %135 = dma.done.wait [#allocation3], 128  }
 0x1d5   :  { %136 = vsyncadd [#allocation3], 4294967168 }
 0x1d6   :  { %101 = vsyncpa [#allocation3], 1 }

</bundles_post_ra>
